<compile_context>
chip_gen: v6e
topology: v6e:2x2x1
jax: 0.10.0
libtpu: 0.0.40
codegen_flags: <defaults>
</compile_context>

<pallas_src>
import math

import jax
import jax.numpy as jnp
from jax import lax
from jax.experimental import pallas as pl
from jax.experimental.pallas import tpu as pltpu

# Small, forward-consistent shapes.
S = 8            # sequence length
B = 2            # batch (power of two -> cheap same-batch mask)
E = 32           # embed_dim
NUM_HEADS = 4    # num_heads
HIDDEN = 64      # hidden_dim of the feed-forward block
HEAD_DIM = E // NUM_HEADS
T = S * B        # tokens per (S, B) block handled by one grid step

# ---- packed weight/bias slab layout (all offsets 8-sublane / lane-0 aligned)
W_COLS = 128
ROW_W_IN = 0                     # rows   0..31 : [Wq_fused*scale | Wk_fused | Wp3] in cols 0..95
ROW_W_MISC = E                   # rows  32..63 : [Wv | Wo | Wl1]                   in cols 0..127
ROW_W_L2 = 2 * E                 # rows 64..127 : Wl2                               in cols 0..31
ROW_B_QKP = 2 * E + HIDDEN       # row 128 : fused (q, k, proj3) biases (96 cols)
ROW_B_V = ROW_B_QKP + 8          # row 136 : bv   (32)
ROW_B_O = ROW_B_V + 8            # row 144 : bo   (32)
ROW_B_L1 = ROW_B_O + 8           # row 152 : bl1  (64)
ROW_B_L2 = ROW_B_L1 + 8          # row 160 : bl2  (32)
W_ROWS = ROW_B_L2 + 8            # 168 rows total  (~86 KB f32)

_MASK_VALUE = -1e30              # exp underflows to exactly 0 for masked scores


def _erf(z):
    # Abramowitz & Stegun 7.1.26 polynomial erf (max abs err ~1.5e-7, i.e. f32
    # precision).  Used because lax.erf is not guaranteed to lower in Mosaic.
    a1, a2, a3, a4, a5 = 0.254829592, -0.284496736, 1.421413741, -1.453152027, 1.061405429
    p = 0.3275911
    az = jnp.abs(z)
    t = 1.0 / (1.0 + p * az)
    poly = ((((a5 * t + a4) * t + a3) * t + a2) * t + a1) * t
    r = 1.0 - poly * jnp.exp(-az * az)
    return jnp.where(z >= 0, r, -r)


def _gelu_exact(x):
    # Matches torch nn.GELU() default (approximate='none').
    return 0.5 * x * (1.0 + _erf(x * (1.0 / math.sqrt(2.0))))


def attention_block_kernel(x_ref, ca_ref, w_ref, out_ref):
    x = x_ref[...]                                    # (T, E)  one (S, B) token block
    ca = ca_ref[...]                                  # (T, E)

    # --- fused in-projection: ONE MXU push -> q | k | proj3(x) ---------------
    w_in = w_ref[ROW_W_IN:ROW_W_IN + E, :]            # (E, 128); cols 96.. are zero pad
    b_in = w_ref[ROW_B_QKP:ROW_B_QKP + 1, :]          # (1, 128)
    y = jnp.dot(x, w_in, preferred_element_type=jnp.float32) + b_in
    q = y[:, 0:E]                                     # already scaled by 1/sqrt(HEAD_DIM)
    k = y[:, E:2 * E]
    v_pre = y[:, 2 * E:3 * E] * ca                    # proj3(x) * ca

    w_misc = w_ref[ROW_W_MISC:ROW_W_MISC + E, :]      # (E, 128) = [Wv | Wo | Wl1]
    w_v = w_misc[:, 0:E]
    w_o = w_misc[:, E:2 * E]
    w_l1 = w_misc[:, 2 * E:2 * E + HIDDEN]

    # V in-projection must stay separate (the *ca sits between the linears).
    b_v = w_ref[ROW_B_V:ROW_B_V + 1, 0:E]
    v = jnp.dot(v_pre, w_v, preferred_element_type=jnp.float32) + b_v

    # Same-batch mask: token r belongs to batch r % B (B is a power of two).
    ri = lax.broadcasted_iota(jnp.int32, (T, T), 0)
    rj = lax.broadcasted_iota(jnp.int32, (T, T), 1)
    same_batch = (ri & (B - 1)) == (rj & (B - 1))

    # Head lane-id map (built once); per-head masks keep every matmul operand a
    # clean full-lane-width vreg view -> no sub-vreg lane extraction.
    lane = lax.broadcasted_iota(jnp.int32, (T, E), 1)

    o_all = jnp.zeros((T, E), jnp.float32)
    for h in range(NUM_HEADS):                        # static unroll over heads
        lo = h * HEAD_DIM
        hm = (lane >= lo) & (lane < lo + HEAD_DIM)    # head-h lane mask
        qh = jnp.where(hm, q, 0.0)                    # zero non-head lanes of q
        vh = jnp.where(hm, v, 0.0)                    # zero non-head lanes of v
        s = lax.dot_general(qh, k, (((1,), (1,)), ((), ())),
                            preferred_element_type=jnp.float32)       # (T, T)
        s = jnp.where(same_batch, s, _MASK_VALUE)
        s = s - jnp.max(s, axis=-1, keepdims=True)
        p = jnp.exp(s)                                # masked entries -> exactly 0
        p = p * pl.reciprocal(jnp.sum(p, axis=-1, keepdims=True), approx=True)
        o_all = o_all + jnp.dot(p, vh, preferred_element_type=jnp.float32)

    # Single out-projection after the head loop (heads are disjoint lane bands).
    b_o = w_ref[ROW_B_O:ROW_B_O + 1, 0:E]
    x1 = x + jnp.dot(o_all, w_o, preferred_element_type=jnp.float32) + b_o

    # --- feed-forward (Dropout(p=0.0) is identity) ----------------------------
    b_l1 = w_ref[ROW_B_L1:ROW_B_L1 + 1, 0:HIDDEN]
    h1 = _gelu_exact(jnp.dot(x1, w_l1, preferred_element_type=jnp.float32) + b_l1)

    w_l2 = w_ref[ROW_W_L2:ROW_W_L2 + HIDDEN, 0:E]     # (HIDDEN, E)
    b_l2 = w_ref[ROW_B_L2:ROW_B_L2 + 1, 0:E]
    mlp = jnp.dot(h1, w_l2, preferred_element_type=jnp.float32) + b_l2

    out_ref[...] = x1 + mlp


def make_params(key):
    ks = jax.random.split(key, 14)

    def init(k, shape, scale=0.05):
        return (scale * jax.random.normal(k, shape)).astype(jnp.float32)

    # Shapes follow the PyTorch module's __init__ (weights are (out, in)).
    return {
        "w1": init(ks[0], (E, E)), "b1": init(ks[1], (E,)),
        "w2": init(ks[2], (E, E)), "b2": init(ks[3], (E,)),
        "w3": init(ks[4], (E, E)), "b3": init(ks[5], (E,)),
        "in_proj_w": init(ks[6], (3 * E, E)), "in_proj_b": init(ks[7], (3 * E,)),
        "out_proj_w": init(ks[8], (E, E)), "out_proj_b": init(ks[9], (E,)),
        "l1_w": init(ks[10], (HIDDEN, E)), "l1_b": init(ks[11], (HIDDEN,)),
        "l2_w": init(ks[12], (E, HIDDEN)), "l2_b": init(ks[13], (E,)),
    }


def pack_params(params):
    """One-time (outside the jitted call) weight fusion + packing.

    Fuses proj1->Wq and proj2->Wk (folding in the 1/sqrt(HEAD_DIM) score
    scale), then packs every weight and bias into a single sublane-aligned
    (W_ROWS, 128) f32 slab so the kernel takes one weight operand.
    """
    hi = jax.lax.Precision.HIGHEST

    def t(w):                        # torch (out, in) -> row-major (in, out)
        return jnp.asarray(w, jnp.float32).T

    wq, wk, wv = jnp.split(params["in_proj_w"], 3, axis=0)
    bq, bk, bv = jnp.split(params["in_proj_b"], 3, axis=0)

    a1, a2, a3 = t(params["w1"]), t(params["w2"]), t(params["w3"])
    aq, ak, av = t(wq), t(wk), t(wv)

    scale = 1.0 / math.sqrt(HEAD_DIM)
    w_q_fused = jnp.dot(a1, aq, precision=hi) * scale   # scale folded into weights
    w_k_fused = jnp.dot(a2, ak, precision=hi)
    b_q_fused = (jnp.dot(params["b1"], aq, precision=hi) + bq) * scale
    b_k_fused = jnp.dot(params["b2"], ak, precision=hi) + bk

    w_in = jnp.concatenate([w_q_fused, w_k_fused, a3], axis=1)              # (E, 3E)
    w_misc = jnp.concatenate(
        [av, t(params["out_proj_w"]), t(params["l1_w"])], axis=1)           # (E, 2E+H)
    w_l2 = t(params["l2_w"])                                                # (H, E)
    b_qkp = jnp.concatenate([b_q_fused, b_k_fused, params["b3"]])           # (3E,)

    slab = jnp.zeros((W_ROWS, W_COLS), jnp.float32)
    slab = slab.at[ROW_W_IN:ROW_W_IN + E, 0:3 * E].set(w_in)
    slab = slab.at[ROW_W_MISC:ROW_W_MISC + E, 0:2 * E + HIDDEN].set(w_misc)
    slab = slab.at[ROW_W_L2:ROW_W_L2 + HIDDEN, 0:E].set(w_l2)
    slab = slab.at[ROW_B_QKP, 0:3 * E].set(b_qkp)
    slab = slab.at[ROW_B_V, 0:E].set(bv)
    slab = slab.at[ROW_B_O, 0:E].set(params["out_proj_b"])
    slab = slab.at[ROW_B_L1, 0:HIDDEN].set(params["l1_b"])
    slab = slab.at[ROW_B_L2, 0:E].set(params["l2_b"])
    return slab


@jax.jit
def attention_block(x, ca, w_slab):
    """x, ca: (S, B, E) or (num_blocks..., S, B, E) — leading dims are streamed
    through a 1-D grid with the weight slab VMEM-resident across steps."""
    assert x.shape[-3:] == (S, B, E) and ca.shape == x.shape
    n_blocks = math.prod(x.shape[:-3])
    # (..., S, B, E) -> (n_blocks*T, E) is a free, contiguous reshape
    # (sequence-major token order); no transposes anywhere in the wrapper.
    x2 = x.reshape(n_blocks * T, E)
    ca2 = ca.reshape(n_blocks * T, E)
    # Only shard the block axis across cores once there is enough work (v7x).
    sem = ("parallel",) if n_blocks >= 8 else ("arbitrary",)
    out = pl.pallas_call(
        attention_block_kernel,
        out_shape=jax.ShapeDtypeStruct((n_blocks * T, E), jnp.float32),
        grid_spec=pltpu.PrefetchScalarGridSpec(
            num_scalar_prefetch=0,
            grid=(n_blocks,),
            in_specs=[
                pl.BlockSpec((T, E), lambda n: (n, 0)),
                pl.BlockSpec((T, E), lambda n: (n, 0)),
                # Constant block index -> weights stay resident across steps.
                pl.BlockSpec((W_ROWS, W_COLS), lambda n: (0, 0)),
            ],
            out_specs=pl.BlockSpec((T, E), lambda n: (n, 0)),
        ),
        compiler_params=pltpu.CompilerParams(dimension_semantics=sem),
    )(x2, ca2, w_slab)
    return out.reshape(x.shape)


def reference(x, ca, params):
    # Pure-JAX reference mirroring the PyTorch forward.
    def lin(v, w, b):
        return v @ w.T + b

    Q = lin(x, params["w1"], params["b1"])
    K = lin(x, params["w2"], params["b2"])
    V = lin(x, params["w3"], params["b3"]) * ca

    wq, wk, wv = jnp.split(params["in_proj_w"], 3, axis=0)
    bq, bk, bv = jnp.split(params["in_proj_b"], 3, axis=0)
    q, k, v = lin(Q, wq, bq), lin(K, wk, bk), lin(V, wv, bv)

    def split_heads(z):  # (S, B, E) -> (B, H, S, Dh)
        return z.reshape(S, B, NUM_HEADS, HEAD_DIM).transpose(1, 2, 0, 3)

    qh, kh, vh = split_heads(q), split_heads(k), split_heads(v)
    scores = jnp.einsum("bhqd,bhkd->bhqk", qh, kh) / math.sqrt(HEAD_DIM)
    p = jax.nn.softmax(scores, axis=-1)
    o = jnp.einsum("bhqk,bhkd->bhqd", p, vh)
    o = o.transpose(2, 0, 1, 3).reshape(S, B, E)
    attn_out = lin(o, params["out_proj_w"], params["out_proj_b"])
    x1 = x + attn_out
    h = jax.nn.gelu(lin(x1, params["l1_w"], params["l1_b"]), approximate=False)
    mlp = lin(h, params["l2_w"], params["l2_b"])
    return x1 + mlp


if __name__ == "__main__":
    key = jax.random.PRNGKey(0)
    kx, kca, kp = jax.random.split(key, 3)
    x = jax.random.normal(kx, (S, B, E), dtype=jnp.float32)
    ca = jax.random.normal(kca, (S, B, E), dtype=jnp.float32)
    params = make_params(kp)
    w_slab = pack_params(params)      # weight fusion/packing done once, not per call

    # Module-shaped single block.
    out = jax.block_until_ready(attention_block(x, ca, w_slab))
    ref = reference(x, ca, params)
    assert out.shape == (S, B, E)
    err = float(jnp.max(jnp.abs(out - ref)))
    # Tolerance covers the stacked budget: composed weight fusion, the A&S erf
    # polynomial, and the EUP approximate reciprocal in the softmax.
    assert jnp.allclose(out, ref, atol=2e-3, rtol=2e-3), err

    # Amortized multi-block path: several independent (S, B, E) blocks run in
    # ONE pallas_call with the weight slab resident across grid steps.
    NBLK = 4
    kx2, kca2 = jax.random.split(jax.random.PRNGKey(1), 2)
    xm = jax.random.normal(kx2, (NBLK, S, B, E), dtype=jnp.float32)
    cam = jax.random.normal(kca2, (NBLK, S, B, E), dtype=jnp.float32)
    outm = jax.block_until_ready(attention_block(xm, cam, w_slab))
    refm = jax.vmap(lambda a, b: reference(a, b, params))(xm, cam)
    errm = float(jnp.max(jnp.abs(outm - refm)))
    assert jnp.allclose(outm, refm, atol=2e-3, rtol=2e-3), errm

    print("KERNEL_OK")
</pallas_src>

<mosaic_0001>
module attributes {stable_mosaic.version = 11 : i64} {
  func.func @attention_block_kernel(%arg0: i32, %arg1: memref<16x32xf32, #tpu.memory_space<vmem>>, %arg2: memref<16x32xf32, #tpu.memory_space<vmem>>, %arg3: memref<168x128xf32, #tpu.memory_space<vmem>>, %arg4: memref<16x32xf32, #tpu.memory_space<vmem>>) attributes {dimension_semantics = [#tpu.dimension_semantics<arbitrary>], iteration_bounds = array<i64: 1>, scalar_prefetch = 0 : i64, scratch_operands = 0 : i64, tpu.core_type = #tpu.core_type<tc>, window_params = [{transform_indices = @transform_0, window_bounds = array<i64: 16, 32>}, {transform_indices = @transform_1, window_bounds = array<i64: 16, 32>}, {pipeline_mode = #tpu.pipeline_mode<synchronous>, transform_indices = @transform_2, window_bounds = array<i64: 168, 128>}, {transform_indices = @transform_3, window_bounds = array<i64: 16, 32>}]} {
    %c0 = arith.constant 0 : index
    %c0_0 = arith.constant 0 : index
    %0 = vector.load %arg1[%c0, %c0_0] : memref<16x32xf32, #tpu.memory_space<vmem>>, vector<16x32xf32>
    %c0_1 = arith.constant 0 : index
    %c0_2 = arith.constant 0 : index
    %1 = vector.load %arg2[%c0_1, %c0_2] : memref<16x32xf32, #tpu.memory_space<vmem>>, vector<16x32xf32>
    %c0_3 = arith.constant 0 : index
    %c0_4 = arith.constant 0 : index
    %2 = vector.load %arg3[%c0_3, %c0_4] : memref<168x128xf32, #tpu.memory_space<vmem>>, vector<32x128xf32>
    %c128 = arith.constant 128 : index
    %c0_5 = arith.constant 0 : index
    %3 = vector.load %arg3[%c128, %c0_5] : memref<168x128xf32, #tpu.memory_space<vmem>>, vector<1x128xf32>
    %cst = arith.constant dense<0.000000e+00> : vector<16x128xf32>
    %4 = tpu.matmul %0, %2, %cst {dimension_numbers = #tpu.dot_dimension_numbers<[1], [0], [0], [1], [0, 0, 1, 1], [], []>} : vector<16x32xf32>, vector<32x128xf32>, vector<16x128xf32> -> vector<16x128xf32>
    %5 = vector.broadcast %3 : vector<1x128xf32> to vector<16x128xf32>
    %6 = arith.addf %4, %5 : vector<16x128xf32>
    %7 = vector.extract_strided_slice %6 {offsets = [0, 0], sizes = [16, 32], strides = [1, 1]} : vector<16x128xf32> to vector<16x32xf32>
    %8 = vector.extract_strided_slice %6 {offsets = [0, 32], sizes = [16, 32], strides = [1, 1]} : vector<16x128xf32> to vector<16x32xf32>
    %9 = vector.extract_strided_slice %6 {offsets = [0, 64], sizes = [16, 32], strides = [1, 1]} : vector<16x128xf32> to vector<16x32xf32>
    %10 = arith.mulf %9, %1 : vector<16x32xf32>
    %c32 = arith.constant 32 : index
    %c0_6 = arith.constant 0 : index
    %11 = vector.load %arg3[%c32, %c0_6] : memref<168x128xf32, #tpu.memory_space<vmem>>, vector<32x128xf32>
    %12 = vector.extract_strided_slice %11 {offsets = [0, 0], sizes = [32, 32], strides = [1, 1]} : vector<32x128xf32> to vector<32x32xf32>
    %13 = vector.extract_strided_slice %11 {offsets = [0, 32], sizes = [32, 32], strides = [1, 1]} : vector<32x128xf32> to vector<32x32xf32>
    %14 = vector.extract_strided_slice %11 {offsets = [0, 64], sizes = [32, 64], strides = [1, 1]} : vector<32x128xf32> to vector<32x64xf32>
    %c136 = arith.constant 136 : index
    %c0_7 = arith.constant 0 : index
    %15 = vector.load %arg3[%c136, %c0_7] : memref<168x128xf32, #tpu.memory_space<vmem>>, vector<1x32xf32>
    %cst_8 = arith.constant dense<0.000000e+00> : vector<16x32xf32>
    %16 = tpu.matmul %10, %12, %cst_8 {dimension_numbers = #tpu.dot_dimension_numbers<[1], [0], [0], [1], [0, 0, 1, 1], [], []>} : vector<16x32xf32>, vector<32x32xf32>, vector<16x32xf32> -> vector<16x32xf32>
    %17 = vector.broadcast %15 : vector<1x32xf32> to vector<16x32xf32>
    %18 = arith.addf %16, %17 : vector<16x32xf32>
    %19 = tpu.iota {dimensions = array<i32: 0>} : vector<16x16xi32>
    %20 = tpu.iota {dimensions = array<i32: 1>} : vector<16x16xi32>
    %c1_i32 = arith.constant 1 : i32
    %21 = vector.broadcast %c1_i32 : i32 to vector<16x16xi32>
    %22 = arith.andi %19, %21 : vector<16x16xi32>
    %c1_i32_9 = arith.constant 1 : i32
    %23 = vector.broadcast %c1_i32_9 : i32 to vector<16x16xi32>
    %24 = arith.andi %20, %23 : vector<16x16xi32>
    %25 = arith.cmpi eq, %22, %24 : vector<16x16xi32>
    %26 = tpu.iota {dimensions = array<i32: 1>} : vector<16x32xi32>
    %cst_10 = arith.constant 0.000000e+00 : f32
    %27 = vector.broadcast %cst_10 : f32 to vector<16x32xf32>
    %c0_i32 = arith.constant 0 : i32
    %28 = vector.broadcast %c0_i32 : i32 to vector<16x32xi32>
    %29 = arith.cmpi sge, %26, %28 : vector<16x32xi32>
    %c8_i32 = arith.constant 8 : i32
    %30 = vector.broadcast %c8_i32 : i32 to vector<16x32xi32>
    %31 = arith.cmpi slt, %26, %30 : vector<16x32xi32>
    %32 = arith.andi %29, %31 : vector<16x32xi1>
    %cst_11 = arith.constant 0.000000e+00 : f32
    %33 = vector.broadcast %cst_11 : f32 to vector<16x32xf32>
    %34 = arith.select %32, %7, %33 : vector<16x32xi1>, vector<16x32xf32>
    %cst_12 = arith.constant 0.000000e+00 : f32
    %35 = vector.broadcast %cst_12 : f32 to vector<16x32xf32>
    %36 = arith.select %32, %18, %35 : vector<16x32xi1>, vector<16x32xf32>
    %cst_13 = arith.constant dense<0.000000e+00> : vector<16x16xf32>
    %37 = tpu.matmul %34, %8, %cst_13 {dimension_numbers = #tpu.dot_dimension_numbers<[1], [1], [0], [0], [0, 0, 1, 0], [], []>} : vector<16x32xf32>, vector<16x32xf32>, vector<16x16xf32> -> vector<16x16xf32>
    %cst_14 = arith.constant -1.000000e+30 : f32
    %38 = vector.broadcast %cst_14 : f32 to vector<16x16xf32>
    %39 = arith.select %25, %37, %38 : vector<16x16xi1>, vector<16x16xf32>
    %cst_15 = arith.constant dense<0xFF800000> : vector<16xf32>
    %40 = vector.multi_reduction <maximumf>, %39, %cst_15 [1] : vector<16x16xf32> to vector<16xf32>
    %41 = vector.shape_cast %40 : vector<16xf32> to vector<16x1xf32>
    %42 = vector.broadcast %41 : vector<16x1xf32> to vector<16x16xf32>
    %43 = arith.subf %39, %42 : vector<16x16xf32>
    %44 = math.exp %43 : vector<16x16xf32>
    %cst_16 = arith.constant dense<0.000000e+00> : vector<16xf32>
    %45 = vector.multi_reduction <add>, %44, %cst_16 [1] : vector<16x16xf32> to vector<16xf32>
    %46 = vector.shape_cast %45 : vector<16xf32> to vector<16x1xf32>
    %47 = tpu.reciprocal %46 {approx = true} : vector<16x1xf32> -> vector<16x1xf32>
    %48 = vector.broadcast %47 : vector<16x1xf32> to vector<16x16xf32>
    %49 = arith.mulf %44, %48 : vector<16x16xf32>
    %cst_17 = arith.constant dense<0.000000e+00> : vector<16x32xf32>
    %50 = tpu.matmul %49, %36, %cst_17 {dimension_numbers = #tpu.dot_dimension_numbers<[1], [0], [0], [1], [0, 0, 1, 1], [], []>} : vector<16x16xf32>, vector<16x32xf32>, vector<16x32xf32> -> vector<16x32xf32>
    %51 = arith.addf %27, %50 : vector<16x32xf32>
    %c8_i32_18 = arith.constant 8 : i32
    %52 = vector.broadcast %c8_i32_18 : i32 to vector<16x32xi32>
    %53 = arith.cmpi sge, %26, %52 : vector<16x32xi32>
    %c16_i32 = arith.constant 16 : i32
    %54 = vector.broadcast %c16_i32 : i32 to vector<16x32xi32>
    %55 = arith.cmpi slt, %26, %54 : vector<16x32xi32>
    %56 = arith.andi %53, %55 : vector<16x32xi1>
    %cst_19 = arith.constant 0.000000e+00 : f32
    %57 = vector.broadcast %cst_19 : f32 to vector<16x32xf32>
    %58 = arith.select %56, %7, %57 : vector<16x32xi1>, vector<16x32xf32>
    %cst_20 = arith.constant 0.000000e+00 : f32
    %59 = vector.broadcast %cst_20 : f32 to vector<16x32xf32>
    %60 = arith.select %56, %18, %59 : vector<16x32xi1>, vector<16x32xf32>
    %cst_21 = arith.constant dense<0.000000e+00> : vector<16x16xf32>
    %61 = tpu.matmul %58, %8, %cst_21 {dimension_numbers = #tpu.dot_dimension_numbers<[1], [1], [0], [0], [0, 0, 1, 0], [], []>} : vector<16x32xf32>, vector<16x32xf32>, vector<16x16xf32> -> vector<16x16xf32>
    %cst_22 = arith.constant -1.000000e+30 : f32
    %62 = vector.broadcast %cst_22 : f32 to vector<16x16xf32>
    %63 = arith.select %25, %61, %62 : vector<16x16xi1>, vector<16x16xf32>
    %cst_23 = arith.constant dense<0xFF800000> : vector<16xf32>
    %64 = vector.multi_reduction <maximumf>, %63, %cst_23 [1] : vector<16x16xf32> to vector<16xf32>
    %65 = vector.shape_cast %64 : vector<16xf32> to vector<16x1xf32>
    %66 = vector.broadcast %65 : vector<16x1xf32> to vector<16x16xf32>
    %67 = arith.subf %63, %66 : vector<16x16xf32>
    %68 = math.exp %67 : vector<16x16xf32>
    %cst_24 = arith.constant dense<0.000000e+00> : vector<16xf32>
    %69 = vector.multi_reduction <add>, %68, %cst_24 [1] : vector<16x16xf32> to vector<16xf32>
    %70 = vector.shape_cast %69 : vector<16xf32> to vector<16x1xf32>
    %71 = tpu.reciprocal %70 {approx = true} : vector<16x1xf32> -> vector<16x1xf32>
    %72 = vector.broadcast %71 : vector<16x1xf32> to vector<16x16xf32>
    %73 = arith.mulf %68, %72 : vector<16x16xf32>
    %cst_25 = arith.constant dense<0.000000e+00> : vector<16x32xf32>
    %74 = tpu.matmul %73, %60, %cst_25 {dimension_numbers = #tpu.dot_dimension_numbers<[1], [0], [0], [1], [0, 0, 1, 1], [], []>} : vector<16x16xf32>, vector<16x32xf32>, vector<16x32xf32> -> vector<16x32xf32>
    %75 = arith.addf %51, %74 : vector<16x32xf32>
    %c16_i32_26 = arith.constant 16 : i32
    %76 = vector.broadcast %c16_i32_26 : i32 to vector<16x32xi32>
    %77 = arith.cmpi sge, %26, %76 : vector<16x32xi32>
    %c24_i32 = arith.constant 24 : i32
    %78 = vector.broadcast %c24_i32 : i32 to vector<16x32xi32>
    %79 = arith.cmpi slt, %26, %78 : vector<16x32xi32>
    %80 = arith.andi %77, %79 : vector<16x32xi1>
    %cst_27 = arith.constant 0.000000e+00 : f32
    %81 = vector.broadcast %cst_27 : f32 to vector<16x32xf32>
    %82 = arith.select %80, %7, %81 : vector<16x32xi1>, vector<16x32xf32>
    %cst_28 = arith.constant 0.000000e+00 : f32
    %83 = vector.broadcast %cst_28 : f32 to vector<16x32xf32>
    %84 = arith.select %80, %18, %83 : vector<16x32xi1>, vector<16x32xf32>
    %cst_29 = arith.constant dense<0.000000e+00> : vector<16x16xf32>
    %85 = tpu.matmul %82, %8, %cst_29 {dimension_numbers = #tpu.dot_dimension_numbers<[1], [1], [0], [0], [0, 0, 1, 0], [], []>} : vector<16x32xf32>, vector<16x32xf32>, vector<16x16xf32> -> vector<16x16xf32>
    %cst_30 = arith.constant -1.000000e+30 : f32
    %86 = vector.broadcast %cst_30 : f32 to vector<16x16xf32>
    %87 = arith.select %25, %85, %86 : vector<16x16xi1>, vector<16x16xf32>
    %cst_31 = arith.constant dense<0xFF800000> : vector<16xf32>
    %88 = vector.multi_reduction <maximumf>, %87, %cst_31 [1] : vector<16x16xf32> to vector<16xf32>
    %89 = vector.shape_cast %88 : vector<16xf32> to vector<16x1xf32>
    %90 = vector.broadcast %89 : vector<16x1xf32> to vector<16x16xf32>
    %91 = arith.subf %87, %90 : vector<16x16xf32>
    %92 = math.exp %91 : vector<16x16xf32>
    %cst_32 = arith.constant dense<0.000000e+00> : vector<16xf32>
    %93 = vector.multi_reduction <add>, %92, %cst_32 [1] : vector<16x16xf32> to vector<16xf32>
    %94 = vector.shape_cast %93 : vector<16xf32> to vector<16x1xf32>
    %95 = tpu.reciprocal %94 {approx = true} : vector<16x1xf32> -> vector<16x1xf32>
    %96 = vector.broadcast %95 : vector<16x1xf32> to vector<16x16xf32>
    %97 = arith.mulf %92, %96 : vector<16x16xf32>
    %cst_33 = arith.constant dense<0.000000e+00> : vector<16x32xf32>
    %98 = tpu.matmul %97, %84, %cst_33 {dimension_numbers = #tpu.dot_dimension_numbers<[1], [0], [0], [1], [0, 0, 1, 1], [], []>} : vector<16x16xf32>, vector<16x32xf32>, vector<16x32xf32> -> vector<16x32xf32>
    %99 = arith.addf %75, %98 : vector<16x32xf32>
    %c24_i32_34 = arith.constant 24 : i32
    %100 = vector.broadcast %c24_i32_34 : i32 to vector<16x32xi32>
    %101 = arith.cmpi sge, %26, %100 : vector<16x32xi32>
    %c32_i32 = arith.constant 32 : i32
    %102 = vector.broadcast %c32_i32 : i32 to vector<16x32xi32>
    %103 = arith.cmpi slt, %26, %102 : vector<16x32xi32>
    %104 = arith.andi %101, %103 : vector<16x32xi1>
    %cst_35 = arith.constant 0.000000e+00 : f32
    %105 = vector.broadcast %cst_35 : f32 to vector<16x32xf32>
    %106 = arith.select %104, %7, %105 : vector<16x32xi1>, vector<16x32xf32>
    %cst_36 = arith.constant 0.000000e+00 : f32
    %107 = vector.broadcast %cst_36 : f32 to vector<16x32xf32>
    %108 = arith.select %104, %18, %107 : vector<16x32xi1>, vector<16x32xf32>
    %cst_37 = arith.constant dense<0.000000e+00> : vector<16x16xf32>
    %109 = tpu.matmul %106, %8, %cst_37 {dimension_numbers = #tpu.dot_dimension_numbers<[1], [1], [0], [0], [0, 0, 1, 0], [], []>} : vector<16x32xf32>, vector<16x32xf32>, vector<16x16xf32> -> vector<16x16xf32>
    %cst_38 = arith.constant -1.000000e+30 : f32
    %110 = vector.broadcast %cst_38 : f32 to vector<16x16xf32>
    %111 = arith.select %25, %109, %110 : vector<16x16xi1>, vector<16x16xf32>
    %cst_39 = arith.constant dense<0xFF800000> : vector<16xf32>
    %112 = vector.multi_reduction <maximumf>, %111, %cst_39 [1] : vector<16x16xf32> to vector<16xf32>
    %113 = vector.shape_cast %112 : vector<16xf32> to vector<16x1xf32>
    %114 = vector.broadcast %113 : vector<16x1xf32> to vector<16x16xf32>
    %115 = arith.subf %111, %114 : vector<16x16xf32>
    %116 = math.exp %115 : vector<16x16xf32>
    %cst_40 = arith.constant dense<0.000000e+00> : vector<16xf32>
    %117 = vector.multi_reduction <add>, %116, %cst_40 [1] : vector<16x16xf32> to vector<16xf32>
    %118 = vector.shape_cast %117 : vector<16xf32> to vector<16x1xf32>
    %119 = tpu.reciprocal %118 {approx = true} : vector<16x1xf32> -> vector<16x1xf32>
    %120 = vector.broadcast %119 : vector<16x1xf32> to vector<16x16xf32>
    %121 = arith.mulf %116, %120 : vector<16x16xf32>
    %cst_41 = arith.constant dense<0.000000e+00> : vector<16x32xf32>
    %122 = tpu.matmul %121, %108, %cst_41 {dimension_numbers = #tpu.dot_dimension_numbers<[1], [0], [0], [1], [0, 0, 1, 1], [], []>} : vector<16x16xf32>, vector<16x32xf32>, vector<16x32xf32> -> vector<16x32xf32>
    %123 = arith.addf %99, %122 : vector<16x32xf32>
    %c144 = arith.constant 144 : index
    %c0_42 = arith.constant 0 : index
    %124 = vector.load %arg3[%c144, %c0_42] : memref<168x128xf32, #tpu.memory_space<vmem>>, vector<1x32xf32>
    %cst_43 = arith.constant dense<0.000000e+00> : vector<16x32xf32>
    %125 = tpu.matmul %123, %13, %cst_43 {dimension_numbers = #tpu.dot_dimension_numbers<[1], [0], [0], [1], [0, 0, 1, 1], [], []>} : vector<16x32xf32>, vector<32x32xf32>, vector<16x32xf32> -> vector<16x32xf32>
    %126 = arith.addf %0, %125 : vector<16x32xf32>
    %127 = vector.broadcast %124 : vector<1x32xf32> to vector<16x32xf32>
    %128 = arith.addf %126, %127 : vector<16x32xf32>
    %c152 = arith.constant 152 : index
    %c0_44 = arith.constant 0 : index
    %129 = vector.load %arg3[%c152, %c0_44] : memref<168x128xf32, #tpu.memory_space<vmem>>, vector<1x64xf32>
    %cst_45 = arith.constant dense<0.000000e+00> : vector<16x64xf32>
    %130 = tpu.matmul %128, %14, %cst_45 {dimension_numbers = #tpu.dot_dimension_numbers<[1], [0], [0], [1], [0, 0, 1, 1], [], []>} : vector<16x32xf32>, vector<32x64xf32>, vector<16x64xf32> -> vector<16x64xf32>
    %131 = vector.broadcast %129 : vector<1x64xf32> to vector<16x64xf32>
    %132 = arith.addf %130, %131 : vector<16x64xf32>
    %cst_46 = arith.constant 5.000000e-01 : f32
    %133 = vector.broadcast %cst_46 : f32 to vector<16x64xf32>
    %134 = arith.mulf %133, %132 : vector<16x64xf32>
    %cst_47 = arith.constant 0.707106769 : f32
    %135 = vector.broadcast %cst_47 : f32 to vector<16x64xf32>
    %136 = arith.mulf %132, %135 : vector<16x64xf32>
    %137 = math.absf %136 : vector<16x64xf32>
    %cst_48 = arith.constant 0.327591091 : f32
    %138 = vector.broadcast %cst_48 : f32 to vector<16x64xf32>
    %139 = arith.mulf %138, %137 : vector<16x64xf32>
    %cst_49 = arith.constant 1.000000e+00 : f32
    %140 = vector.broadcast %cst_49 : f32 to vector<16x64xf32>
    %141 = arith.addf %140, %139 : vector<16x64xf32>
    %cst_50 = arith.constant 1.000000e+00 : f32
    %142 = vector.broadcast %cst_50 : f32 to vector<16x64xf32>
    %143 = arith.divf %142, %141 : vector<16x64xf32>
    %cst_51 = arith.constant 1.06140542 : f32
    %144 = vector.broadcast %cst_51 : f32 to vector<16x64xf32>
    %145 = arith.mulf %144, %143 : vector<16x64xf32>
    %cst_52 = arith.constant -1.45315206 : f32
    %146 = vector.broadcast %cst_52 : f32 to vector<16x64xf32>
    %147 = arith.addf %145, %146 : vector<16x64xf32>
    %148 = arith.mulf %147, %143 : vector<16x64xf32>
    %cst_53 = arith.constant 1.42141378 : f32
    %149 = vector.broadcast %cst_53 : f32 to vector<16x64xf32>
    %150 = arith.addf %148, %149 : vector<16x64xf32>
    %151 = arith.mulf %150, %143 : vector<16x64xf32>
    %cst_54 = arith.constant -0.284496725 : f32
    %152 = vector.broadcast %cst_54 : f32 to vector<16x64xf32>
    %153 = arith.addf %151, %152 : vector<16x64xf32>
    %154 = arith.mulf %153, %143 : vector<16x64xf32>
    %cst_55 = arith.constant 0.254829586 : f32
    %155 = vector.broadcast %cst_55 : f32 to vector<16x64xf32>
    %156 = arith.addf %154, %155 : vector<16x64xf32>
    %157 = arith.mulf %156, %143 : vector<16x64xf32>
    %cst_56 = arith.constant 0.000000e+00 : f32
    %158 = vector.broadcast %cst_56 : f32 to vector<16x64xf32>
    %159 = arith.subf %158, %137 : vector<16x64xf32>
    %160 = arith.mulf %159, %137 : vector<16x64xf32>
    %161 = math.exp %160 : vector<16x64xf32>
    %162 = arith.mulf %157, %161 : vector<16x64xf32>
    %cst_57 = arith.constant 1.000000e+00 : f32
    %163 = vector.broadcast %cst_57 : f32 to vector<16x64xf32>
    %164 = arith.subf %163, %162 : vector<16x64xf32>
    %cst_58 = arith.constant 0.000000e+00 : f32
    %165 = vector.broadcast %cst_58 : f32 to vector<16x64xf32>
    %166 = arith.cmpf oge, %136, %165 : vector<16x64xf32>
    %cst_59 = arith.constant 0.000000e+00 : f32
    %167 = vector.broadcast %cst_59 : f32 to vector<16x64xf32>
    %168 = arith.subf %167, %164 : vector<16x64xf32>
    %169 = arith.select %166, %164, %168 : vector<16x64xi1>, vector<16x64xf32>
    %cst_60 = arith.constant 1.000000e+00 : f32
    %170 = vector.broadcast %cst_60 : f32 to vector<16x64xf32>
    %171 = arith.addf %170, %169 : vector<16x64xf32>
    %172 = arith.mulf %134, %171 : vector<16x64xf32>
    %c64 = arith.constant 64 : index
    %c0_61 = arith.constant 0 : index
    %173 = vector.load %arg3[%c64, %c0_61] : memref<168x128xf32, #tpu.memory_space<vmem>>, vector<64x32xf32>
    %c160 = arith.constant 160 : index
    %c0_62 = arith.constant 0 : index
    %174 = vector.load %arg3[%c160, %c0_62] : memref<168x128xf32, #tpu.memory_space<vmem>>, vector<1x32xf32>
    %cst_63 = arith.constant dense<0.000000e+00> : vector<16x32xf32>
    %175 = tpu.matmul %172, %173, %cst_63 {dimension_numbers = #tpu.dot_dimension_numbers<[1], [0], [0], [1], [0, 0, 1, 1], [], []>} : vector<16x64xf32>, vector<64x32xf32>, vector<16x32xf32> -> vector<16x32xf32>
    %176 = vector.broadcast %174 : vector<1x32xf32> to vector<16x32xf32>
    %177 = arith.addf %175, %176 : vector<16x32xf32>
    %178 = arith.addf %128, %177 : vector<16x32xf32>
    %c0_64 = arith.constant 0 : index
    %c0_65 = arith.constant 0 : index
    %179 = vector.load %arg4[%c0_64, %c0_65] : memref<16x32xf32, #tpu.memory_space<vmem>>, vector<16x32xf32>
    tpu.vector_store %arg4[%c0_64, %c0_65], %178 {strides = array<i32>} : memref<16x32xf32, #tpu.memory_space<vmem>>, vector<16x32xf32>,
    return
  }
  func.func @transform_0(%arg0: i32) -> (i32, i32) {
    %c0_i32 = arith.constant 0 : i32
    %c0_i32_0 = arith.constant 0 : i32
    return %arg0, %c0_i32 : i32, i32
  }
  func.func @transform_1(%arg0: i32) -> (i32, i32) {
    %c0_i32 = arith.constant 0 : i32
    %c0_i32_0 = arith.constant 0 : i32
    return %arg0, %c0_i32 : i32, i32
  }
  func.func @transform_2(%arg0: i32) -> (i32, i32) {
    %c0_i32 = arith.constant 0 : i32
    %c0_i32_0 = arith.constant 0 : i32
    %c0_i32_1 = arith.constant 0 : i32
    return %c0_i32, %c0_i32_0 : i32, i32
  }
  func.func @transform_3(%arg0: i32) -> (i32, i32) {
    %c0_i32 = arith.constant 0 : i32
    %c0_i32_0 = arith.constant 0 : i32
    return %arg0, %c0_i32 : i32, i32
  }
}

</mosaic_0001>

<bundles_post_ra>
// kernel: attention_block.1
= control target key start
LH: loop header
LB: loop body
LE: loop exit
PB: predicated region body
PF: predicated region fallthrough
CT: control target
= control target key end

     0   :  { %8 = vsyncpa [#allocation3], 0  ;;  %s2119_s0 = inlined_call_operand.hbm [shape: f32[16,32], index: 0, kind: input, shape index: {}]   ;;  %s2120_s1 = inlined_call_operand.hbm [shape: f32[16,32], index: 1, kind: input, shape index: {}]   ;;  %s2121_s2 = inlined_call_operand.hbm [shape: f32[168,128], index: 2, kind: input, shape index: {}]   ;;  %s2122_s3 = inlined_call_operand.hbm [shape: f32[16,32], index: 3, kind: output, shape index: {}]  }
   0x1   :  { %9 = vsyncpa [#allocation6], 0 }
   0x2   :  { %10 = vsyncpa [#allocation4], 0  ;;  %s1793_s12 = smov [#allocation5]   ;;  %s1794_s14 = smov [#allocation2]  }
   0x3   :  { %s28_s13 = sshll.u32 %s1793_s12, 4  ;;  %s16_s15 = sshll.u32 %s1794_s14, 4  ;;  %s29_s13 = int_to_ptr.vmem [resolvable:$true] %s28_s13  ;;  %s17_s15 = int_to_ptr.vmem [resolvable:$true] %s16_s15 }
   0x4   :  { %s1715_s16 = scalar_lea.vmem %s29_s13, 256  ;;  %p1720_p1 = scmp.lt.s32.totalorder %s29_s13, %s29_s13 }
   0x5   :  { %p1716_p0 = scmp.ne.s32.totalorder %s29_s13, %s1715_s16  ;;  %p1721_p2 = scmp.lt.s32.totalorder %s1715_s16, %s1715_s16 }
   0x7   :  { %p1722_p3 = por %p1721_p2, %p1720_p1 }
   0x9   :  { %p1723_p4 = pnand %p1722_p3, %p1716_p0 }
   0xb   :  { %1726 = shalt.err (!%p1723_p4)
}
   0xc   :  { %s1795_s17 = smov 128   ;;  %s1796_s18 = smov 8  }
   0xd   :  { %34 = dma.hbm_to_vmem [thread:$0]  %s2120_s1, 256, %s29_s13, [#allocation6], %s1795_s17, %s1795_s17, %s1796_s18  }
   0xe   :  { %s1735_s21 = scalar_lea.vmem %s17_s15, 256  ;;  %p1740_p6 = scmp.lt.s32.totalorder %s17_s15, %s17_s15 }
   0xf   :  { %p1736_p5 = scmp.ne.s32.totalorder %s17_s15, %s1735_s21  ;;  %p1741_p7 = scmp.lt.s32.totalorder %s1735_s21, %s1735_s21 }
  0x11   :  { %p1742_p8 = por %p1741_p7, %p1740_p6 }
  0x13   :  { %p1743_p9 = pnand %p1742_p8, %p1736_p5 }
  0x15   :  { %1746 = shalt.err (!%p1743_p9)
}
  0x16   :  { %22 = dma.hbm_to_vmem [thread:$0]  %s2119_s0, 256, %s17_s15, [#allocation3], %s1795_s17, %s1795_s17, %s1796_s18  }
  0x17   :  { %s1797_s24 = smov [#allocation7]  }
  0x18   :  { %s40_s25 = sshll.u32 %s1797_s24, 4  ;;  %s41_s25 = int_to_ptr.vmem [resolvable:$true] %s40_s25 }
  0x19   :  { %s1755_s26 = scalar_lea.vmem %s41_s25, 2688  ;;  %p1760_p11 = scmp.lt.s32.totalorder %s41_s25, %s41_s25 }
  0x1a   :  { %p1756_p10 = scmp.ne.s32.totalorder %s41_s25, %s1755_s26  ;;  %p1761_p12 = scmp.lt.s32.totalorder %s1755_s26, %s1755_s26 }
  0x1c   :  { %p1762_p13 = por %p1761_p12, %p1760_p11 }
  0x1e   :  { %p1763_p0 = pnand %p1762_p13, %p1756_p10 }
  0x20   :  { %1766 = shalt.err (!%p1763_p0)
}
  0x21   :  { %46 = dma.hbm_to_vmem [thread:$0]  %s2121_s2, 2688, %s41_s25, [#allocation6], %s1795_s17, %s1795_s17, %s1796_s18  }
  0x22   :  { %1787 = dma.done.wait [#allocation3], 256  }
  0x23   :  { %1788 = vsyncadd [#allocation3], 4294967040 }
  0x24   :  { %1789 = dma.done.wait [#allocation6], 2944  }
  0x25   :  { %1790 = vsyncadd [#allocation6], 4294964352  ;;  %vm69_vm0 = vcmask 261120   ;;  %v63_v0 = vld [vmem:[#allocation7 + $0x18] sm:$0xff]  ;;  %v62_v1 = vld [vmem:[#allocation7 + $0x10] sm:$0xff]  ;;  %s1798_s0 = smov 64   ;;  %v255_v13 = vlaneseq }
  0x26   :  { %1540 = vmatprep.subr.mxu1 %v63_v0  ;;  %v1839_v2 = vld [vmem:[#allocation2] sm:$0xff]  ;;  %v61_v3 = vld [vmem:[#allocation7 + $0x8] sm:$0xff]  ;;  %v58_v4 = vld [vmem:[#allocation5] sm:$0xff]  ;;  %s1799_s2 = smov 96   ;;  %vm365_vm9 = vcmask 130048   ;;  %s1800_s28 = smov [#allocation8]  }
  0x27   :  { %1541 = vmatpush3.msra.mxu1 %v63_v0  ;;  %1548 = vmatprep.mubr.msk.f32.mxu1 %vm69_vm0, %v1839_v2  ;;  %v60_v5 = vld [vmem:[#allocation7] sm:$0xff]  ;;  %v59_v6 = vld [vmem:[#allocation5 + $0x8] sm:$0xff]  ;;  %v1844_v7 = vld [vmem:[#allocation2 + $0x8] sm:$0xff]  ;;  %v1865_v17 = vand.u32 127, %v255_v13  ;;  %v256_v32 = vshrl.u32 %v255_v13, 7  ;;  %s1414_s29 = sshll.u32 %s1800_s28, 4  ;;  %s1415_s29 = int_to_ptr.vmem [resolvable:$true] %s1414_s29 }
  0x28   :  { %1542 = vmatprep.subr.mxu1 %v62_v1  ;;  %153 = vrot.lane.b32.xlu0 %v58_v4, %s1798_s0  ;;  %v1849_v8 = vld [vmem:[#allocation7 + $0x38] sm:$0xff]  ;;  %v1851_v9 = vld [vmem:[#allocation7 + $0x30] sm:$0xff]  ;;  %v1855_v10 = vld [vmem:[#allocation7 + $0x28] sm:$0xff]  ;;  %s1767_s30 = scalar_lea.vmem %s1415_s29, 256  ;;  %p1772_p2 = scmp.lt.s32.totalorder %s1415_s29, %s1415_s29 }
  0x29   :  { %1543 = vmatpush3.msra.mxu1 %v62_v1  ;;  %v1859_v11 = vld [vmem:[#allocation7 + $0x20] sm:$0xff]  ;;  %vm266_vm1 = vcmp.lt.s32.totalorder %v1865_v17, 8  ;;  %vm388_vm2 = vcmp.ge.s32.totalorder %v1865_v17, 8  ;;  %vm389_vm3 = vcmp.lt.s32.totalorder %v1865_v17, 16  ;;  %v1430_v33 = vld [vmem:[#allocation7 + $0x88] ss:$0 sm:$0xff]  ;;  %p1768_p1 = scmp.ne.s32.totalorder %s1415_s29, %s1767_s30  ;;  %p1773_p3 = scmp.lt.s32.totalorder %s1767_s30, %s1767_s30 }
  0x2a   :  { %1544 = vmatprep.subr.mxu1 %v61_v3  ;;  %v1427_v14 = vld [vmem:[#allocation7 + $0x80] ss:$0 sm:$0xff]  ;;  %vm1895_vm4 = vmand %vm388_vm2, %vm389_vm3  ;;  %v257_v34 = vadd.s32 8, %v256_v32  ;;  %v262_v39 = vand.u32 1, %v1865_v17  ;;  %vm662_vm5 = vcmp.ge.s32.totalorder %v1865_v17, 16  ;;  %vm663_vm6 = vcmp.lt.s32.totalorder %v1865_v17, 24 }
  0x2b   :  { %1545 = vmatpush3.msra.mxu1 %v61_v3  ;;  %v260_v41 = vand.u32 1, %v256_v32  ;;  %vm1959_vm8 = vmand %vm662_vm5, %vm663_vm6  ;;  %vm857_vm11 = vcmp.ge.s32.totalorder %v1865_v17, 24  ;;  %vm858_vm12 = vcmp.lt.s32.totalorder %v1865_v17, 32  ;;  %p1774_p4 = por %p1773_p3, %p1772_p2 }
  0x2c   :  { %1546 = vmatprep.subr.mxu1 %v60_v5  ;;  %155 = vrot.lane.b32.xlu0 %v59_v6, %s1798_s0  ;;  %v261_v38 = vand.u32 1, %v257_v34  ;;  %vm2000_vm13 = vmand %vm857_vm11, %vm858_vm12 }
  0x2d   :  { %1547 = vmatpush3.msra.mxu1 %v60_v5  ;;  %vm1968_vm10 = vcmp.eq.s32.totalorder %v260_v41, %v262_v39  ;;  %p1775_p5 = pnand %p1774_p4, %p1768_p1 }
  0x2e   :  { %1549 = vmatmul.mubr.msk.f32.vlgmr.msra.gmra.mxu1 %vm69_vm0, %v1844_v7  ;;  %1551 = vmatprep.subr.mxu1 %v1849_v8  ;;  %vm1955_vm7 = vcmp.eq.s32.totalorder %v261_v38, %v262_v39 }
  0x2f   :  { %1552 = vmatpush3.msra.mxu1 %v1849_v8 }
  0x30   :  { %1553 = vmatprep.subr.mxu1 %v1851_v9 }
  0x31   :  { %1554 = vmatpush3.msra.mxu1 %v1851_v9 }
  0x32   :  { %1555 = vmatprep.subr.mxu1 %v1855_v10 }
  0x33   :  { %1556 = vmatpush3.msra.mxu1 %v1855_v10 }
  0x34   :  { %1557 = vmatprep.subr.mxu1 %v1859_v11 }
  0x35   :  { %1558 = vmatpush3.msra.mxu1 %v1859_v11 }
  0x9a   :  { %v154_v12 = vpop.permute.xlu0 %153 }
  0x9e   :  { %v156_v16 = vpop.permute.xlu0 %155 }
  0xee   :  { %v1550_v15 = vpop.f32.mrf.mxu1 }
  0xef   :  { %v1867_v18 = vadd.f32 %v1550_v15, %v1427_v14 }
  0xf0   :  { %v142_v19 = vpop.f32.mrf.mxu1 }
  0xf1   :  { %v160_v20 = vmul.f32 %v156_v16, %v1867_v18  ;;  %v1870_v21 = vadd.f32 %v1427_v14, %v142_v19  ;;  %276 = vrot.lane.b32.xlu1 %v1867_v18, %s1799_s2  ;;  %v269_v30 = vsel %vm266_vm1, %v1867_v18, 0.0  ;;  %v392_v31 = vsel %vm1895_vm4, %v1867_v18, 0.0 }
  0xf2   :  { %v666_v19 = vsel %vm1959_vm8, %v1867_v18, 0.0 }
  0xf3   :  { %174 = vrot.lane.b32.xlu0 %v160_v20, %s1798_s0  ;;  %v268_v22 = vsel %vm266_vm1, %v1870_v21, 0.0  ;;  %v159_v23 = vmul.f32 %v154_v12, %v1870_v21  ;;  %v391_v28 = vsel %vm1895_vm4, %v1870_v21, 0.0  ;;  %v665_v15 = vsel %vm1959_vm8, %v1870_v21, 0.0 }
  0xf4   :  { %1566 = vmatprep.mubr.msk.f32.mxu0 %vm69_vm0, %v268_v22 }
  0xf5   :  { %172 = vrot.lane.b32.xlu1 %v159_v23, %s1798_s0 }
  0xf9   :  { %274 = vrot.lane.b32.xlu1 %v1870_v21, %s1799_s2 }
 0x163   :  { %v1884_v24 = vpop.permute.xlu1 %276 }
 0x164   :  { %1562 = vmatprep.subr.msk.mxu0 %vm69_vm0, %v1884_v24  ;;  %1569 = vmatprep.subr.msk.mxu1 %vm69_vm0, %v1884_v24 }
 0x165   :  { %1563 = vmatpush3.xpose.msk.msra.mxu0 %vm69_vm0, %v1884_v24  ;;  %v175_v26 = vpop.permute.xlu0 %174 }
 0x167   :  { %v173_v25 = vpop.permute.xlu1 %172 }
 0x168   :  { %1559 = vmatprep.mubr.msk.f32.mxu1 %vm69_vm0, %v173_v25 }
 0x169   :  { %1560 = vmatmul.mubr.msk.f32.vlgmr.msra.gmra.mxu1 %vm69_vm0, %v175_v26 }
 0x16a   :  { %1570 = vmatpush3.xpose.msk.msra.mxu1 %vm69_vm0, %v1884_v24  ;;  %1573 = vmatprep.mubr.msk.f32.mxu1 %vm69_vm0, %v391_v28 }
 0x16b   :  { %v1906_v29 = vpop.permute.xlu1 %274 }
 0x16c   :  { %1564 = vmatprep.subr.msk.mxu0 %vm69_vm0, %v1906_v29  ;;  %1571 = vmatprep.subr.msk.mxu1 %vm69_vm0, %v1906_v29 }
 0x16d   :  { %1565 = vmatpush3.xpose.msk.msra.mxu0 %vm69_vm0, %v1906_v29 }
 0x16e   :  { %1572 = vmatpush3.xpose.msk.msra.mxu1 %vm69_vm0, %v1906_v29 }
 0x170   :  { %1567 = vmatmul.mubr.msk.f32.vlgmr.msra.gmra.mxu0 %vm69_vm0, %v269_v30 }
 0x171   :  { %1574 = vmatmul.mubr.msk.f32.vlgmr.msra.gmra.mxu1 %vm69_vm0, %v392_v31 }
 0x229   :  { %v1561_v35 = vpop.f32.mrf.mxu1 }
 0x22a   :  { %v1924_v36 = vadd.f32 %v1561_v35, %v1430_v33 }
 0x22b   :  { %v246_v37 = vpop.f32.mrf.mxu1 }
 0x22c   :  { %v1927_v40 = vadd.f32 %v1430_v33, %v246_v37  ;;  %1576 = vmatprep.subr.msk.mxu0 %vm1895_vm4, %v1924_v36  ;;  %1583 = vmatprep.subr.msk.mxu1 %vm266_vm1, %v1924_v36 }
 0x22d   :  { %1577 = vmatpush3.msk.msra.mxu0 %vm1895_vm4, %v1924_v36  ;;  %1584 = vmatpush3.msk.msra.mxu1 %vm266_vm1, %v1924_v36 }
 0x22e   :  { %1578 = vmatprep.subr.msk.mxu0 %vm1895_vm4, %v1927_v40  ;;  %1585 = vmatprep.subr.msk.mxu1 %vm266_vm1, %v1927_v40 }
 0x22f   :  { %1579 = vmatpush3.msk.msra.mxu0 %vm1895_vm4, %v1927_v40  ;;  %1586 = vmatpush3.msk.msra.mxu1 %vm266_vm1, %v1927_v40  ;;  %vm1323_vm1 = vcmask 523264  }
 0x230   :  { %v1568_v44 = vpop.f32.mrf.mxu0  ;;  %1590 = vmatprep.subr.msk.mxu0 %vm69_vm0, %v1884_v24  ;;  %1597 = vmatprep.subr.msk.mxu1 %vm1959_vm8, %v1924_v36 }
 0x231   :  { %v1575_v45 = vpop.f32.mrf.mxu1  ;;  %v364_v1 = vsel %vm1955_vm7, %v1568_v44, -1e+30 }
 0x232   :  { %v477_v47 = vsel %vm1955_vm7, %v1575_v45, -1e+30  ;;  %v354_v48 = vpop.f32.mrf.mxu0  ;;  %v369_v3 = vsel %vm365_vm9, %v364_v1, -inf }
 0x233   :  { %v467_v49 = vpop.f32.mrf.mxu1  ;;  %v481_v50 = vsel %vm365_vm9, %v477_v47, -inf  ;;  %v363_v51 = vsel %vm1968_vm10, %v354_v48, -1e+30 }
 0x234   :  { %v476_v52 = vsel %vm1968_vm10, %v467_v49, -1e+30  ;;  %482 = vmax.xlane.f32.xlu1 %v481_v50  ;;  %v366_v54 = vsel %vm365_vm9, %v363_v51, -inf }
 0x235   :  { %v478_v53 = vsel %vm365_vm9, %v476_v52, -inf }
 0x236   :  { %479 = vmax.xlane.f32.xlu0 %v478_v53 }
 0x238   :  { %367 = vmax.xlane.f32.xlu1 %v366_v54 }
 0x2bd   :  { %v483_v55 = vpop.xlane.xlu1 %482 }
 0x2be   :  { %v485_v56 = vsub.f32 %v477_v47, %v483_v55 }
 0x2bf   :  { %v480_v57 = vpop.xlane.xlu0 %479 }
 0x2c0   :  { %v484_v58 = vsub.f32 %v476_v52, %v480_v57  ;;  %v488_v59 = vmul.f32 1.442695, %v485_v56 }
 0x2c1   :  { %v368_v20 = vpop.xlane.xlu1 %367 }
 0x2c2   :  { %v486_v60 = vmul.f32 1.442695, %v484_v58  ;;  %v372_v23 = vsub.f32 %v363_v51, %v368_v20 }
 0x2c4   :  { %1667 = vpow2.f32 %v486_v60  ;;  %v374_v26 = vmul.f32 1.442695, %v372_v23 }
 0x2c5   :  { %1669 = vpow2.f32 %v488_v59 }
 0x2d1   :  { %v1668_v61 = vpop.eup %1667 }
 0x2d2   :  { %v490_v62 = vsel %vm365_vm9, %v1668_v61, 0.0  ;;  %v1670_v63 = vpop.eup %1669 }
 0x2d3   :  { %491 = vadd.xlane.f32.xlu0 %v490_v62  ;;  %v493_v0 = vsel %vm365_vm9, %v1670_v63, 0.0 }
 0x2d7   :  { %494 = vadd.xlane.f32.xlu0 %v493_v0 }
 0x2db   :  { %370 = vmax.xlane.f32.xlu0 %v369_v3 }
 0x35c   :  { %v492_v4 = vpop.xlane.xlu0 %491 }
 0x35d   :  { %1671 = vrcp.f32 %v492_v4 }
 0x360   :  { %v495_v5 = vpop.xlane.xlu0 %494 }
 0x361   :  { %1673 = vrcp.f32 %v495_v5 }
 0x364   :  { %v371_v17 = vpop.xlane.xlu0 %370 }
 0x365   :  { %v373_v22 = vsub.f32 %v364_v1, %v371_v17 }
 0x367   :  { %v376_v25 = vmul.f32 1.442695, %v373_v22 }
 0x369   :  { %1675 = vpow2.f32 %v376_v25 }
 0x36a   :  { %v1672_v6 = vpop.eup %1671  ;;  %1677 = vpow2.f32 %v374_v26 }
 0x36b   :  { %v498_v12 = vmul.f32 %v1672_v6, %v1668_v61 }
 0x36d   :  { %1580 = vmatprep.mubr.msk.f32.mxu0 %vm365_vm9, %v498_v12 }
 0x36e   :  { %v1674_v13 = vpop.eup %1673 }
 0x36f   :  { %v499_v14 = vmul.f32 %v1674_v13, %v1670_v63 }
 0x371   :  { %1581 = vmatmul.mubr.msk.f32.vlgmr.msra.gmra.mxu0 %vm365_vm9, %v499_v14 }
 0x372   :  { %1591 = vmatpush3.xpose.msk.msra.mxu0 %vm69_vm0, %v1884_v24  ;;  %1594 = vmatprep.mubr.msk.f32.mxu0 %vm69_vm0, %v665_v15 }
 0x373   :  { %1592 = vmatprep.subr.msk.mxu0 %vm69_vm0, %v1906_v29 }
 0x376   :  { %1593 = vmatpush3.xpose.msk.msra.mxu0 %vm69_vm0, %v1906_v29  ;;  %v1676_v34 = vpop.eup %1675 }
 0x377   :  { %1611 = vmatprep.subr.msk.mxu0 %vm2000_vm13, %v1924_v36  ;;  %v1678_v38 = vpop.eup %1677  ;;  %v381_v39 = vsel %vm365_vm9, %v1676_v34, 0.0 }
 0x378   :  { %v378_v41 = vsel %vm365_vm9, %v1678_v38, 0.0 }
 0x379   :  { %1595 = vmatmul.mubr.msk.f32.vlgmr.msra.gmra.mxu0 %vm69_vm0, %v666_v19 }
 0x37a   :  { %1612 = vmatpush3.msk.msra.mxu0 %vm2000_vm13, %v1924_v36 }
 0x37b   :  { %1613 = vmatprep.subr.msk.mxu0 %vm2000_vm13, %v1927_v40 }
 0x37c   :  { %1614 = vmatpush3.msk.msra.mxu0 %vm2000_vm13, %v1927_v40 }
 0x431   :  { %v2020_v27 = vpop.f32.mrf.mxu0 }
 0x433   :  { %v2022_v28 = vpop.f32.mrf.mxu0 }
 0x439   :  { %v1596_v30 = vpop.f32.mrf.mxu0 }
 0x43a   :  { %v751_v31 = vsel %vm1955_vm7, %v1596_v30, -1e+30 }
 0x43b   :  { %v741_v32 = vpop.f32.mrf.mxu0  ;;  %v755_v33 = vsel %vm365_vm9, %v751_v31, -inf }
 0x43c   :  { %v750_v35 = vsel %vm1968_vm10, %v741_v32, -1e+30  ;;  %756 = vmax.xlane.f32.xlu0 %v755_v33 }
 0x43d   :  { %v752_v37 = vsel %vm365_vm9, %v750_v35, -inf }
 0x43e   :  { %753 = vmax.xlane.f32.xlu1 %v752_v37 }
 0x440   :  { %382 = vadd.xlane.f32.xlu0 %v381_v39 }
 0x442   :  { %379 = vadd.xlane.f32.xlu1 %v378_v41 }
 0x4c5   :  { %v757_v44 = vpop.xlane.xlu0 %756 }
 0x4c6   :  { %v759_v45 = vsub.f32 %v751_v31, %v757_v44 }
 0x4c7   :  { %v754_v47 = vpop.xlane.xlu1 %753 }
 0x4c8   :  { %v762_v48 = vmul.f32 1.442695, %v759_v45  ;;  %v758_v49 = vsub.f32 %v750_v35, %v754_v47 }
 0x4c9   :  { %v383_v50 = vpop.xlane.xlu0 %382 }
 0x4ca   :  { %1679 = vpow2.f32 %v762_v48  ;;  %v760_v51 = vmul.f32 1.442695, %v758_v49 }
 0x4cb   :  { %1681 = vrcp.f32 %v383_v50  ;;  %v380_v52 = vpop.xlane.xlu1 %379 }
 0x4cc   :  { %1683 = vpow2.f32 %v760_v51 }
 0x4cd   :  { %1685 = vrcp.f32 %v380_v52  ;;  %v1467_v52 = vld [vmem:[#allocation7 + $0x90] ss:$0 sm:$0xff] }
 0x4d7   :  { %v1680_v53 = vpop.eup %1679 }
 0x4d8   :  { %v1682_v54 = vpop.eup %1681  ;;  %v767_v55 = vsel %vm365_vm9, %v1680_v53, 0.0 }
 0x4d9   :  { %v1684_v56 = vpop.eup %1683  ;;  %768 = vadd.xlane.f32.xlu0 %v767_v55  ;;  %v387_v60 = vmul.f32 %v1682_v54, %v1676_v34 }
 0x4da   :  { %v1686_v57 = vpop.eup %1685  ;;  %v764_v58 = vsel %vm365_vm9, %v1684_v56, 0.0 }
 0x4db   :  { %765 = vadd.xlane.f32.xlu1 %v764_v58  ;;  %v386_v59 = vmul.f32 %v1686_v57, %v1678_v38  ;;  %v1316_v57 = vld [vmem:[#allocation7 + $0x70] sm:$0xff]  ;;  %v1313_v58 = vld [vmem:[#allocation7 + $0x58] sm:$0xff] }
 0x4dd   :  { %1587 = vmatprep.mubr.msk.f32.mxu1 %vm365_vm9, %v386_v59  ;;  %v1312_v59 = vld [vmem:[#allocation7 + $0x50] sm:$0xff] }
 0x4de   :  { %1588 = vmatmul.mubr.msk.f32.vlgmr.msra.gmra.mxu1 %vm365_vm9, %v387_v60  ;;  %v1311_v60 = vld [vmem:[#allocation7 + $0x48] sm:$0xff] }
 0x4df   :  { %1598 = vmatpush3.msk.msra.mxu1 %vm1959_vm8, %v1924_v36  ;;  %v860_v36 = vsel %vm2000_vm13, %v1870_v21, 0.0 }
 0x4e0   :  { %1599 = vmatprep.subr.msk.mxu1 %vm1959_vm8, %v1927_v40 }
 0x4e1   :  { %1600 = vmatpush3.msk.msra.mxu1 %vm1959_vm8, %v1927_v40  ;;  %v861_v40 = vsel %vm2000_vm13, %v1867_v18, 0.0 }
 0x4e2   :  { %1604 = vmatprep.subr.msk.mxu1 %vm69_vm0, %v1884_v24 }
 0x562   :  { %v769_v61 = vpop.xlane.xlu0 %768 }
 0x563   :  { %1687 = vrcp.f32 %v769_v61  ;;  %v1310_v61 = vld [vmem:[#allocation7 + $0x40] sm:$0xff] }
 0x564   :  { %v766_v62 = vpop.xlane.xlu1 %765 }
 0x565   :  { %1689 = vrcp.f32 %v766_v62  ;;  %v1468_v62 = vld [vmem:[#allocation7 + $0x98] ss:$0 sm:$0xff] }
 0x570   :  { %v1688_v63 = vpop.eup %1687 }
 0x571   :  { %v773_v3 = vmul.f32 %v1688_v63, %v1680_v53 }
 0x572   :  { %v1690_v0 = vpop.eup %1689 }
 0x573   :  { %v772_v1 = vmul.f32 %v1690_v0, %v1684_v56  ;;  %v1317_v56 = vld [vmem:[#allocation7 + $0x78] sm:$0xff] }
 0x575   :  { %1601 = vmatprep.mubr.msk.f32.mxu1 %vm365_vm9, %v772_v1 }
 0x576   :  { %1602 = vmatmul.mubr.msk.f32.vlgmr.msra.gmra.mxu1 %vm365_vm9, %v773_v3 }
 0x577   :  { %1605 = vmatpush3.xpose.msk.msra.mxu1 %vm69_vm0, %v1884_v24  ;;  %1608 = vmatprep.mubr.msk.f32.mxu1 %vm69_vm0, %v860_v36 }
 0x578   :  { %1606 = vmatprep.subr.msk.mxu1 %vm69_vm0, %v1906_v29 }
 0x57b   :  { %1607 = vmatpush3.xpose.msk.msra.mxu1 %vm69_vm0, %v1906_v29 }
 0x57e   :  { %1609 = vmatmul.mubr.msk.f32.vlgmr.msra.gmra.mxu1 %vm69_vm0, %v861_v40 }
 0x59e   :  { %v1589_v43 = vpop.f32.mrf.mxu1 }
 0x59f   :  { %v659_v21 = vadd.f32 %v1589_v43, %v2020_v27 }
 0x5a0   :  { %v2063_v4 = vpop.f32.mrf.mxu1 }
 0x5a1   :  { %v654_v38 = vadd.f32 %v2063_v4, %v2022_v28 }
 0x636   :  { %v1603_v24 = vpop.f32.mrf.mxu1 }
 0x637   :  { %v2066_v5 = vadd.f32 %v1603_v24, %v659_v21 }
 0x638   :  { %v846_v6 = vpop.f32.mrf.mxu1 }
 0x639   :  { %v855_v41 = vadd.f32 %v846_v6, %v654_v38 }
 0x63e   :  { %v1610_v12 = vpop.f32.mrf.mxu1 }
 0x63f   :  { %v946_v13 = vsel %vm1955_vm7, %v1610_v12, -1e+30 }
 0x640   :  { %v936_v29 = vpop.f32.mrf.mxu1  ;;  %v950_v14 = vsel %vm365_vm9, %v946_v13, -inf }
 0x641   :  { %v945_v18 = vsel %vm1968_vm10, %v936_v29, -1e+30  ;;  %951 = vmax.xlane.f32.xlu0 %v950_v14 }
 0x642   :  { %v947_v15 = vsel %vm365_vm9, %v945_v18, -inf }
 0x643   :  { %948 = vmax.xlane.f32.xlu1 %v947_v15 }
 0x6ca   :  { %v952_v16 = vpop.xlane.xlu0 %951 }
 0x6cb   :  { %v954_v19 = vsub.f32 %v946_v13, %v952_v16 }
 0x6cc   :  { %v949_v17 = vpop.xlane.xlu1 %948 }
 0x6cd   :  { %v957_v20 = vmul.f32 1.442695, %v954_v19  ;;  %v953_v22 = vsub.f32 %v945_v18, %v949_v17 }
 0x6cf   :  { %1691 = vpow2.f32 %v957_v20  ;;  %v955_v23 = vmul.f32 1.442695, %v953_v22 }
 0x6d1   :  { %1693 = vpow2.f32 %v955_v23 }
 0x6dc   :  { %v1692_v42 = vpop.eup %1691 }
 0x6dd   :  { %v962_v25 = vsel %vm365_vm9, %v1692_v42, 0.0 }
 0x6de   :  { %v1694_v26 = vpop.eup %1693  ;;  %963 = vadd.xlane.f32.xlu0 %v962_v25 }
 0x6df   :  { %v959_v46 = vsel %vm365_vm9, %v1694_v26, 0.0 }
 0x6e0   :  { %960 = vadd.xlane.f32.xlu1 %v959_v46 }
 0x6f1   :  { %1063 = vrot.lane.b32.xlu1 %v1849_v8, %s1799_s2 }
 0x6f4   :  { %1061 = vrot.lane.b32.xlu0 %v1851_v9, %s1799_s2 }
 0x6f5   :  { %1059 = vrot.lane.b32.xlu1 %v1855_v10, %s1799_s2 }
 0x6f8   :  { %1169 = vrot.lane.b32.xlu0 %v1849_v8, %s1798_s0 }
 0x6f9   :  { %1057 = vrot.lane.b32.xlu1 %v1859_v11, %s1799_s2 }
 0x6fc   :  { %1165 = vrot.lane.b32.xlu0 %v1855_v10, %s1798_s0 }
 0x6fd   :  { %1167 = vrot.lane.b32.xlu1 %v1851_v9, %s1798_s0 }
 0x701   :  { %1163 = vrot.lane.b32.xlu1 %v1859_v11, %s1798_s0 }
 0x767   :  { %v964_v27 = vpop.xlane.xlu0 %963 }
 0x768   :  { %1695 = vrcp.f32 %v964_v27 }
 0x769   :  { %v961_v30 = vpop.xlane.xlu1 %960 }
 0x76a   :  { %1697 = vrcp.f32 %v961_v30 }
 0x76b   :  { %v1062_v35 = vpop.permute.xlu0 %1061 }
 0x76d   :  { %v1064_v31 = vpop.permute.xlu1 %1063 }
 0x76e   :  { %1618 = vmatprep.subr.mxu0 %v1064_v31 }
 0x76f   :  { %v1170_v11 = vpop.permute.xlu0 %1169 }
 0x770   :  { %1629 = vmatprep.subr.mxu1 %v1170_v11 }
 0x771   :  { %v1060_v9 = vpop.permute.xlu1 %1059  ;;  %1630 = vmatpush3.msra.mxu1 %v1170_v11 }
 0x773   :  { %v1166_v48 = vpop.permute.xlu0 %1165 }
 0x775   :  { %v1696_v32 = vpop.eup %1695  ;;  %v1058_v10 = vpop.permute.xlu1 %1057 }
 0x776   :  { %v968_v34 = vmul.f32 %v1696_v32, %v1692_v42 }
 0x777   :  { %v1698_v8 = vpop.eup %1697 }
 0x778   :  { %v967_v33 = vmul.f32 %v1698_v8, %v1694_v26 }
 0x779   :  { %v1168_v37 = vpop.permute.xlu1 %1167 }
 0x77a   :  { %1615 = vmatprep.mubr.msk.f32.mxu0 %vm365_vm9, %v967_v33  ;;  %1631 = vmatprep.subr.mxu1 %v1168_v37 }
 0x77b   :  { %1616 = vmatmul.mubr.msk.f32.vlgmr.msra.gmra.mxu0 %vm365_vm9, %v968_v34  ;;  %1632 = vmatpush3.msra.mxu1 %v1168_v37 }
 0x77c   :  { %1619 = vmatpush3.msra.mxu0 %v1064_v31  ;;  %1633 = vmatprep.subr.mxu1 %v1166_v48 }
 0x77d   :  { %1620 = vmatprep.subr.mxu0 %v1062_v35  ;;  %1634 = vmatpush3.msra.mxu1 %v1166_v48  ;;  %v1164_v49 = vpop.permute.xlu1 %1163 }
 0x77e   :  { %1621 = vmatpush3.msra.mxu0 %v1062_v35  ;;  %1635 = vmatprep.subr.mxu1 %v1164_v49 }
 0x77f   :  { %1622 = vmatprep.subr.mxu0 %v1060_v9  ;;  %1636 = vmatpush3.msra.mxu1 %v1164_v49 }
 0x780   :  { %1623 = vmatpush3.msra.mxu0 %v1060_v9 }
 0x781   :  { %1624 = vmatprep.subr.mxu0 %v1058_v10 }
 0x782   :  { %1625 = vmatpush3.msra.mxu0 %v1058_v10 }
 0x783   :  { %1640 = vmatprep.subr.mxu0 %v1317_v56 }
 0x83b   :  { %v1617_v39 = vpop.f32.mrf.mxu0 }
 0x83c   :  { %v1051_v47 = vadd.f32 %v1617_v39, %v2066_v5 }
 0x83d   :  { %v1041_v44 = vpop.f32.mrf.mxu0 }
 0x83e   :  { %v1050_v45 = vadd.f32 %v1041_v44, %v855_v41 }
 0x840   :  { %1626 = vmatprep.mubr.msk.f32.mxu0 %vm69_vm0, %v1050_v45 }
 0x841   :  { %1627 = vmatmul.mubr.msk.f32.vlgmr.msra.gmra.mxu0 %vm69_vm0, %v1051_v47 }
 0x842   :  { %1641 = vmatpush3.msra.mxu0 %v1317_v56 }
 0x843   :  { %1642 = vmatprep.subr.mxu0 %v1316_v57 }
 0x844   :  { %1643 = vmatpush3.msra.mxu0 %v1316_v57  ;;  %v1471_v57 = vld [vmem:[#allocation7 + $0xa0] ss:$0 sm:$0xff] }
 0x901   :  { %v1628_v50 = vpop.f32.mrf.mxu0 }
 0x902   :  { %v1151_v51 = vadd.f32 %v1628_v50, %v1844_v7  ;;  %v1315_v7 = vld [vmem:[#allocation7 + $0x68] sm:$0xff] }
 0x903   :  { %v1141_v28 = vpop.f32.mrf.mxu0  ;;  %1644 = vmatprep.subr.mxu0 %v1315_v7 }
 0x904   :  { %v1150_v53 = vadd.f32 %v1141_v28, %v1839_v2  ;;  %v2103_v55 = vadd.f32 %v1467_v52, %v1151_v51  ;;  %1645 = vmatpush3.msra.mxu0 %v1315_v7  ;;  %v1314_v2 = vld [vmem:[#allocation7 + $0x60] sm:$0xff] }
 0x905   :  { %1646 = vmatprep.subr.mxu0 %v1314_v2 }
 0x906   :  { %v2101_v54 = vadd.f32 %v1467_v52, %v1150_v53  ;;  %1647 = vmatpush3.msra.mxu0 %v1314_v2 }
 0x907   :  { %1648 = vmatprep.subr.mxu0 %v1313_v58 }
 0x908   :  { %1637 = vmatprep.mubr.msk.f32.mxu1 %vm69_vm0, %v2101_v54  ;;  %1649 = vmatpush3.msra.mxu0 %v1313_v58 }
 0x909   :  { %1638 = vmatmul.mubr.msk.f32.vlgmr.msra.gmra.mxu1 %vm69_vm0, %v2103_v55  ;;  %1650 = vmatprep.subr.mxu0 %v1312_v59 }
 0x90a   :  { %1651 = vmatpush3.msra.mxu0 %v1312_v59 }
 0x90b   :  { %1652 = vmatprep.subr.mxu0 %v1311_v60 }
 0x90c   :  { %1653 = vmatpush3.msra.mxu0 %v1311_v60 }
 0x90d   :  { %1654 = vmatprep.subr.mxu0 %v1310_v61 }
 0x90e   :  { %1655 = vmatpush3.msra.mxu0 %v1310_v61 }
 0x9c9   :  { %v1639_v63 = vpop.f32.mrf.mxu1 }
 0x9ca   :  { %v1253_v0 = vadd.f32 %v1639_v63, %v1468_v62 }
 0x9cb   :  { %v1247_v1 = vpop.f32.mrf.mxu1 }
 0x9cc   :  { %v1259_v3 = vmul.f32 0.70710677, %v1253_v0  ;;  %v1248_v36 = vadd.f32 %v1468_v62, %v1247_v1  ;;  %v1257_v52 = vmul.f32 0.5, %v1253_v0 }
 0x9ce   :  { %v1261_v40 = vand.u32 2147483647, %v1259_v3  ;;  %v1258_v43 = vmul.f32 0.70710677, %v1248_v36  ;;  %vm1301_vm14 = vcmp.ge.f32.partialorder %v1259_v3, 0.0  ;;  %v1256_v51 = vmul.f32 0.5, %v1248_v36 }
 0x9d0   :  { %v1263_v4 = vmul.f32 0.3275911, %v1261_v40  ;;  %v1260_v21 = vand.u32 2147483647, %v1258_v43  ;;  %v1289_v12 = vsub.f32 0.0, %v1261_v40  ;;  %vm1300_vm15 = vcmp.ge.f32.partialorder %v1258_v43, 0.0 }
 0x9d2   :  { %v1265_v24 = vadd.f32 1.0, %v1263_v4  ;;  %v1262_v5 = vmul.f32 0.3275911, %v1260_v21  ;;  %v1288_v13 = vsub.f32 0.0, %v1260_v21  ;;  %v1291_v29 = vmul.f32 %v1289_v12, %v1261_v40 }
 0x9d4   :  { %1699 = vrcp.f32 %v1265_v24  ;;  %v1264_v6 = vadd.f32 1.0, %v1262_v5  ;;  %v1290_v18 = vmul.f32 %v1288_v13, %v1260_v21  ;;  %v1294_v16 = vmul.f32 1.442695, %v1291_v29 }
 0x9d6   :  { %1701 = vrcp.f32 %v1264_v6  ;;  %v1292_v22 = vmul.f32 1.442695, %v1290_v18 }
 0x9d7   :  { %1703 = vpow2.f32 %v1294_v16 }
 0x9d8   :  { %1705 = vpow2.f32 %v1292_v22 }
 0x9e1   :  { %v1700_v14 = vpop.eup %1699 }
 0x9e2   :  { %v1271_v15 = vmul.f32 1.0614054, %v1700_v14 }
 0x9e3   :  { %v1702_v19 = vpop.eup %1701 }
 0x9e4   :  { %v1273_v17 = vadd.f32 -1.4531521, %v1271_v15  ;;  %v1270_v20 = vmul.f32 1.0614054, %v1702_v19  ;;  %v1704_v9 = vpop.eup %1703 }
 0x9e5   :  { %v1706_v38 = vpop.eup %1705 }
 0x9e6   :  { %v1275_v23 = vmul.f32 %v1700_v14, %v1273_v17  ;;  %v1272_v42 = vadd.f32 -1.4531521, %v1270_v20 }
 0x9e8   :  { %v1277_v25 = vadd.f32 1.4214138, %v1275_v23  ;;  %v1274_v26 = vmul.f32 %v1702_v19, %v1272_v42 }
 0x9ea   :  { %v1279_v46 = vmul.f32 %v1700_v14, %v1277_v25  ;;  %v1276_v27 = vadd.f32 1.4214138, %v1274_v26 }
 0x9ec   :  { %v1281_v30 = vadd.f32 -0.28449672, %v1279_v46  ;;  %v1278_v31 = vmul.f32 %v1702_v19, %v1276_v27 }
 0x9ee   :  { %v1283_v32 = vmul.f32 %v1700_v14, %v1281_v30  ;;  %v1280_v8 = vadd.f32 -0.28449672, %v1278_v31 }
 0x9f0   :  { %v1285_v33 = vadd.f32 0.2548296, %v1283_v32  ;;  %v1282_v34 = vmul.f32 %v1702_v19, %v1280_v8 }
 0x9f2   :  { %v1287_v35 = vmul.f32 %v1700_v14, %v1285_v33  ;;  %v1284_v10 = vadd.f32 0.2548296, %v1282_v34 }
 0x9f4   :  { %v1297_v11 = vmul.f32 %v1704_v9, %v1287_v35  ;;  %v1286_v37 = vmul.f32 %v1702_v19, %v1284_v10 }
 0x9f6   :  { %v1299_v39 = vsub.f32 1.0, %v1297_v11  ;;  %v1296_v41 = vmul.f32 %v1706_v38, %v1286_v37 }
 0x9f8   :  { %v1303_v44 = vsub.f32 0.0, %v1299_v39  ;;  %v1298_v45 = vsub.f32 1.0, %v1296_v41 }
 0x9fa   :  { %v1305_v47 = vsel %vm1301_vm14, %v1299_v39, %v1303_v44  ;;  %v1302_v48 = vsub.f32 0.0, %v1298_v45 }
 0x9fb   :  { %v1307_v49 = vadd.f32 1.0, %v1305_v47 }
 0x9fc   :  { %v1304_v50 = vsel %vm1300_vm15, %v1298_v45, %v1302_v48 }
 0x9fd   :  { %v1306_v28 = vadd.f32 1.0, %v1304_v50  ;;  %v1309_v56 = vmul.f32 %v1307_v49, %v1257_v52 }
 0x9ff   :  { %v1308_v53 = vmul.f32 %v1306_v28, %v1256_v51 }
 0xa01   :  { %1656 = vmatprep.mubr.msk.f32.mxu0 %vm1323_vm1, %v1308_v53 }
 0xa02   :  { %1657 = vmatmul.mubr.msk.f32.vlgmr.msra.gmra.mxu0 %vm1323_vm1, %v1309_v56 }
 0xac2   :  { %v1658_v7 = vpop.f32.mrf.mxu0 }
 0xac3   :  { %v1402_v2 = vadd.f32 %v1658_v7, %v1471_v57 }
 0xac4   :  { %v1396_v58 = vpop.f32.mrf.mxu0 }
 0xac5   :  { %v1406_v59 = vadd.f32 %v1402_v2, %v2103_v55  ;;  %v1397_v60 = vadd.f32 %v1471_v57, %v1396_v58 }
 0xac7   :  { %1408 = vst.msk [vmem:[#allocation8 + $0x8] sm:$0xff] %vm69_vm0, %v1406_v59  ;;  %v1405_v61 = vadd.f32 %v1397_v60, %v2101_v54 }
 0xac9   :  { %1407 = vst.msk [vmem:[#allocation8] sm:$0xff] %vm69_vm0, %v1405_v61 }
 0xaca   :  { %1778 = shalt.err (!%p1775_p5)
}
 0xacb   :  { %1420 = dma.vmem_to_hbm [thread:$0]  %s1415_s29, 256, %s2122_s3, [#allocation4], %s1795_s17, %s1795_s17, %s1796_s18  }
 0xacc   :  { %1791 = dma.done.wait [#allocation4], 256  }
 0xacd   :  { %1792 = vsyncadd [#allocation4], 4294967040 }
 0xace   :  { %1424 = vsyncpa [#allocation3], 1 }
 0xacf   :  { %1425 = vsyncpa [#allocation6], 1 }
 0xad0   :  { %1426 = vsyncpa [#allocation4], 1 }

</bundles_post_ra>
